<compile_context>
chip_gen: v6e
topology: v6e:2x2x1
jax: 0.10.0
libtpu: 0.0.40
codegen_flags: <defaults>
</compile_context>

<pallas_src>
import jax
import jax.numpy as jnp
from jax.experimental import pallas as pl
from jax.experimental.pallas import tpu as pltpu


def _clip_embedding_kernel(tok_ref, emb_hbm, pos_ref, o_ref, sems):
    """One grid step == one batch row.

    tok_ref: SMEM (B*T,) int32     -- scalar-prefetched, flattened token ids
    emb_hbm: HBM  (n_vocab, E)     -- embedding table (never bulk-copied)
    pos_ref: VMEM (T, E)           -- position embedding (resident, fetched once)
    o_ref:   VMEM (T, E)           -- output tile for batch b (batch dim squeezed)
    sems:    DMA semaphores (T,)   -- one slot per gathered row
    """
    b = pl.program_id(0)
    T, E = o_ref.shape
    base = b * T

    # ---- Phase 1: issue ALL T row gathers (fully unrolled at trace time). ---
    # All SMEM token reads happen here, before any wait, and every row has a
    # private semaphore slot, so there is no slot aliasing and no
    # read-after-wait stall.  Rows land directly in the output tile.
    copies = []
    for t in range(T):
        tok = tok_ref[base + t]
        cp = pltpu.make_async_copy(
            emb_hbm.at[pl.ds(tok, 1), :],
            o_ref.at[pl.ds(t, 1), :],
            sems.at[t],
        )
        cp.start()
        copies.append(cp)

    # ---- Phase 2: drain.  Waits reuse the exact descriptors issued above. ---
    for cp in copies:
        cp.wait()

    # ---- Phase 3: one full-tile vectorized add + single lane-dense store. ---
    o_ref[...] = (o_ref[...] + pos_ref[...]).astype(o_ref.dtype)


def clip_embedding(tokens, token_embedding, position_embedding):
    """tokens: (B, T) int; token_embedding: (n_vocab, E); position_embedding: (T, E)."""
    B, T = tokens.shape
    n_vocab, E = token_embedding.shape
    assert position_embedding.shape == (T, E)

    # Clamp ids so a bad token cannot silently gather arbitrary HBM data, and
    # flatten to 1-D so the SMEM scalar-prefetch buffer stays tiny.
    tokens_flat = jnp.clip(tokens.astype(jnp.int32), 0, n_vocab - 1).reshape(B * T)

    itemsize = jnp.dtype(token_embedding.dtype).itemsize
    cost = pl.CostEstimate(
        flops=B * T * E,                                        # the add
        transcendentals=0,
        bytes_accessed=(2 * B * T * E + T * E) * itemsize + B * T * 4,
    )

    grid_spec = pltpu.PrefetchScalarGridSpec(
        num_scalar_prefetch=1,          # tokens_flat -> SMEM
        grid=(B,),
        in_specs=[
            # Embedding table stays in HBM; rows are DMA-gathered on demand.
            pl.BlockSpec(memory_space=pl.ANY),
            # Position table is small (~230 KB at real CLIP sizes): VMEM-resident,
            # constant index_map so it is fetched once.
            pl.BlockSpec((T, E), lambda b, tok: (0, 0)),
        ],
        # Squeeze the batch dim so the kernel sees a clean 2D (T, E) output
        # tile with E (multiple of 128) on the lane axis -> one unmasked store.
        out_specs=pl.BlockSpec((None, T, E), lambda b, tok: (b, 0, 0)),
        scratch_shapes=[
            pltpu.SemaphoreType.DMA((T,)),   # one semaphore per gathered row
        ],
    )

    return pl.pallas_call(
        _clip_embedding_kernel,
        out_shape=jax.ShapeDtypeStruct((B, T, E), token_embedding.dtype),
        grid_spec=grid_spec,
        compiler_params=pltpu.CompilerParams(
            dimension_semantics=("parallel",)),
        cost_estimate=cost,
    )(tokens_flat, token_embedding, position_embedding)


if __name__ == "__main__":
    # Small shapes consistent with CLIPEmbedding(n_vocab, n_embed, n_tokens).
    n_vocab, n_embed, n_tokens = 64, 128, 8
    batch = 2

    key = jax.random.PRNGKey(0)
    k_tok, k_emb, k_pos = jax.random.split(key, 3)

    tokens = jax.random.randint(k_tok, (batch, n_tokens), 0, n_vocab, dtype=jnp.int32)
    # nn.Embedding weight ~ N(0,1); position_embedding is zero-init in the
    # PyTorch module, but we use small random values so the add path is
    # actually exercised (forward semantics do not depend on init values).
    token_embedding = jax.random.normal(k_emb, (n_vocab, n_embed), dtype=jnp.float32)
    position_embedding = 0.01 * jax.random.normal(
        k_pos, (n_tokens, n_embed), dtype=jnp.float32)

    out = jax.block_until_ready(
        clip_embedding(tokens, token_embedding, position_embedding))

    # Pure-JAX reference: x = token_embedding[tokens] + position_embedding
    ref = token_embedding[tokens] + position_embedding[None, :, :]
    assert out.shape == (batch, n_tokens, n_embed)
    assert jnp.allclose(out, ref, atol=1e-6, rtol=1e-6)

    print("KERNEL_OK")
</pallas_src>

<mosaic_0001>
module attributes {stable_mosaic.version = 11 : i64} {
  func.func @_clip_embedding_kernel(%arg0: i32, %arg1: memref<16xi32, #tpu.memory_space<smem>>, %arg2: memref<64x128xf32, #tpu.memory_space<any>>, %arg3: memref<8x128xf32, #tpu.memory_space<vmem>>, %arg4: memref<1x8x128xf32, #tpu.memory_space<vmem>>, %arg5: memref<8x!tpu.dma_semaphore, #tpu.memory_space<semaphore_mem>>) attributes {dimension_semantics = [#tpu.dimension_semantics<parallel>], iteration_bounds = array<i64: 2>, scalar_prefetch = 1 : i64, scratch_operands = 1 : i64, tpu.core_type = #tpu.core_type<tc>, window_params = [{}, {pipeline_mode = #tpu.pipeline_mode<synchronous>, transform_indices = @transform_1, window_bounds = array<i64: 8, 128>}, {transform_indices = @transform_2, window_bounds = array<i64: 1, 8, 128>}]} {
    %c8_i32 = arith.constant 8 : i32
    %0 = arith.muli %arg0, %c8_i32 : i32
    %c0_i32 = arith.constant 0 : i32
    %1 = arith.addi %0, %c0_i32 : i32
    %2 = arith.index_cast %1 : i32 to index
    %3 = memref.load %arg1[%2] : memref<16xi32, #tpu.memory_space<smem>>
    %c0_i32_0 = arith.constant 0 : i32
    %c0_i32_1 = arith.constant 0 : i32
    %4 = tpu.memref_slice %arg2[%3, %c0_i32_1] : memref<64x128xf32, #tpu.memory_space<any>> -> memref<1x128xf32, #tpu.memory_space<any>>
    %c0_i32_2 = arith.constant 0 : i32
    %c0_i32_3 = arith.constant 0 : i32
    %c0_i32_4 = arith.constant 0 : i32
    %5 = tpu.memref_slice %arg4[%c0_i32_2, %c0_i32_3, %c0_i32_4] : memref<1x8x128xf32, #tpu.memory_space<vmem>> -> memref<1x1x128xf32, #tpu.memory_space<vmem>>
    %6 = tpu.memref_squeeze %5 : memref<1x1x128xf32, #tpu.memory_space<vmem>> -> memref<1x128xf32, #tpu.memory_space<vmem>>
    %7 = tpu.memref_slice %arg5[%c0_i32_0] : memref<8x!tpu.dma_semaphore, #tpu.memory_space<semaphore_mem>> -> memref<1x!tpu.dma_semaphore, #tpu.memory_space<semaphore_mem>>
    %8 = tpu.memref_squeeze %7 : memref<1x!tpu.dma_semaphore, #tpu.memory_space<semaphore_mem>> -> memref<!tpu.dma_semaphore, #tpu.memory_space<semaphore_mem>>
    tpu.enqueue_dma source(%4 : memref<1x128xf32, #tpu.memory_space<any>>) target(%6 : memref<1x128xf32, #tpu.memory_space<vmem>>) target_semaphore(%8 : memref<!tpu.dma_semaphore, #tpu.memory_space<semaphore_mem>>)
    %c1_i32 = arith.constant 1 : i32
    %9 = arith.addi %0, %c1_i32 : i32
    %10 = arith.index_cast %9 : i32 to index
    %11 = memref.load %arg1[%10] : memref<16xi32, #tpu.memory_space<smem>>
    %c1_i32_5 = arith.constant 1 : i32
    %c0_i32_6 = arith.constant 0 : i32
    %12 = tpu.memref_slice %arg2[%11, %c0_i32_6] : memref<64x128xf32, #tpu.memory_space<any>> -> memref<1x128xf32, #tpu.memory_space<any>>
    %c0_i32_7 = arith.constant 0 : i32
    %c1_i32_8 = arith.constant 1 : i32
    %c0_i32_9 = arith.constant 0 : i32
    %13 = tpu.memref_slice %arg4[%c0_i32_7, %c1_i32_8, %c0_i32_9] : memref<1x8x128xf32, #tpu.memory_space<vmem>> -> memref<1x1x128xf32, #tpu.memory_space<vmem>>
    %14 = tpu.memref_squeeze %13 : memref<1x1x128xf32, #tpu.memory_space<vmem>> -> memref<1x128xf32, #tpu.memory_space<vmem>>
    %15 = tpu.memref_slice %arg5[%c1_i32_5] : memref<8x!tpu.dma_semaphore, #tpu.memory_space<semaphore_mem>> -> memref<1x!tpu.dma_semaphore, #tpu.memory_space<semaphore_mem>>
    %16 = tpu.memref_squeeze %15 : memref<1x!tpu.dma_semaphore, #tpu.memory_space<semaphore_mem>> -> memref<!tpu.dma_semaphore, #tpu.memory_space<semaphore_mem>>
    tpu.enqueue_dma source(%12 : memref<1x128xf32, #tpu.memory_space<any>>) target(%14 : memref<1x128xf32, #tpu.memory_space<vmem>>) target_semaphore(%16 : memref<!tpu.dma_semaphore, #tpu.memory_space<semaphore_mem>>)
    %c2_i32 = arith.constant 2 : i32
    %17 = arith.addi %0, %c2_i32 : i32
    %18 = arith.index_cast %17 : i32 to index
    %19 = memref.load %arg1[%18] : memref<16xi32, #tpu.memory_space<smem>>
    %c2_i32_10 = arith.constant 2 : i32
    %c0_i32_11 = arith.constant 0 : i32
    %20 = tpu.memref_slice %arg2[%19, %c0_i32_11] : memref<64x128xf32, #tpu.memory_space<any>> -> memref<1x128xf32, #tpu.memory_space<any>>
    %c0_i32_12 = arith.constant 0 : i32
    %c2_i32_13 = arith.constant 2 : i32
    %c0_i32_14 = arith.constant 0 : i32
    %21 = tpu.memref_slice %arg4[%c0_i32_12, %c2_i32_13, %c0_i32_14] : memref<1x8x128xf32, #tpu.memory_space<vmem>> -> memref<1x1x128xf32, #tpu.memory_space<vmem>>
    %22 = tpu.memref_squeeze %21 : memref<1x1x128xf32, #tpu.memory_space<vmem>> -> memref<1x128xf32, #tpu.memory_space<vmem>>
    %23 = tpu.memref_slice %arg5[%c2_i32_10] : memref<8x!tpu.dma_semaphore, #tpu.memory_space<semaphore_mem>> -> memref<1x!tpu.dma_semaphore, #tpu.memory_space<semaphore_mem>>
    %24 = tpu.memref_squeeze %23 : memref<1x!tpu.dma_semaphore, #tpu.memory_space<semaphore_mem>> -> memref<!tpu.dma_semaphore, #tpu.memory_space<semaphore_mem>>
    tpu.enqueue_dma source(%20 : memref<1x128xf32, #tpu.memory_space<any>>) target(%22 : memref<1x128xf32, #tpu.memory_space<vmem>>) target_semaphore(%24 : memref<!tpu.dma_semaphore, #tpu.memory_space<semaphore_mem>>)
    %c3_i32 = arith.constant 3 : i32
    %25 = arith.addi %0, %c3_i32 : i32
    %26 = arith.index_cast %25 : i32 to index
    %27 = memref.load %arg1[%26] : memref<16xi32, #tpu.memory_space<smem>>
    %c3_i32_15 = arith.constant 3 : i32
    %c0_i32_16 = arith.constant 0 : i32
    %28 = tpu.memref_slice %arg2[%27, %c0_i32_16] : memref<64x128xf32, #tpu.memory_space<any>> -> memref<1x128xf32, #tpu.memory_space<any>>
    %c0_i32_17 = arith.constant 0 : i32
    %c3_i32_18 = arith.constant 3 : i32
    %c0_i32_19 = arith.constant 0 : i32
    %29 = tpu.memref_slice %arg4[%c0_i32_17, %c3_i32_18, %c0_i32_19] : memref<1x8x128xf32, #tpu.memory_space<vmem>> -> memref<1x1x128xf32, #tpu.memory_space<vmem>>
    %30 = tpu.memref_squeeze %29 : memref<1x1x128xf32, #tpu.memory_space<vmem>> -> memref<1x128xf32, #tpu.memory_space<vmem>>
    %31 = tpu.memref_slice %arg5[%c3_i32_15] : memref<8x!tpu.dma_semaphore, #tpu.memory_space<semaphore_mem>> -> memref<1x!tpu.dma_semaphore, #tpu.memory_space<semaphore_mem>>
    %32 = tpu.memref_squeeze %31 : memref<1x!tpu.dma_semaphore, #tpu.memory_space<semaphore_mem>> -> memref<!tpu.dma_semaphore, #tpu.memory_space<semaphore_mem>>
    tpu.enqueue_dma source(%28 : memref<1x128xf32, #tpu.memory_space<any>>) target(%30 : memref<1x128xf32, #tpu.memory_space<vmem>>) target_semaphore(%32 : memref<!tpu.dma_semaphore, #tpu.memory_space<semaphore_mem>>)
    %c4_i32 = arith.constant 4 : i32
    %33 = arith.addi %0, %c4_i32 : i32
    %34 = arith.index_cast %33 : i32 to index
    %35 = memref.load %arg1[%34] : memref<16xi32, #tpu.memory_space<smem>>
    %c4_i32_20 = arith.constant 4 : i32
    %c0_i32_21 = arith.constant 0 : i32
    %36 = tpu.memref_slice %arg2[%35, %c0_i32_21] : memref<64x128xf32, #tpu.memory_space<any>> -> memref<1x128xf32, #tpu.memory_space<any>>
    %c0_i32_22 = arith.constant 0 : i32
    %c4_i32_23 = arith.constant 4 : i32
    %c0_i32_24 = arith.constant 0 : i32
    %37 = tpu.memref_slice %arg4[%c0_i32_22, %c4_i32_23, %c0_i32_24] : memref<1x8x128xf32, #tpu.memory_space<vmem>> -> memref<1x1x128xf32, #tpu.memory_space<vmem>>
    %38 = tpu.memref_squeeze %37 : memref<1x1x128xf32, #tpu.memory_space<vmem>> -> memref<1x128xf32, #tpu.memory_space<vmem>>
    %39 = tpu.memref_slice %arg5[%c4_i32_20] : memref<8x!tpu.dma_semaphore, #tpu.memory_space<semaphore_mem>> -> memref<1x!tpu.dma_semaphore, #tpu.memory_space<semaphore_mem>>
    %40 = tpu.memref_squeeze %39 : memref<1x!tpu.dma_semaphore, #tpu.memory_space<semaphore_mem>> -> memref<!tpu.dma_semaphore, #tpu.memory_space<semaphore_mem>>
    tpu.enqueue_dma source(%36 : memref<1x128xf32, #tpu.memory_space<any>>) target(%38 : memref<1x128xf32, #tpu.memory_space<vmem>>) target_semaphore(%40 : memref<!tpu.dma_semaphore, #tpu.memory_space<semaphore_mem>>)
    %c5_i32 = arith.constant 5 : i32
    %41 = arith.addi %0, %c5_i32 : i32
    %42 = arith.index_cast %41 : i32 to index
    %43 = memref.load %arg1[%42] : memref<16xi32, #tpu.memory_space<smem>>
    %c5_i32_25 = arith.constant 5 : i32
    %c0_i32_26 = arith.constant 0 : i32
    %44 = tpu.memref_slice %arg2[%43, %c0_i32_26] : memref<64x128xf32, #tpu.memory_space<any>> -> memref<1x128xf32, #tpu.memory_space<any>>
    %c0_i32_27 = arith.constant 0 : i32
    %c5_i32_28 = arith.constant 5 : i32
    %c0_i32_29 = arith.constant 0 : i32
    %45 = tpu.memref_slice %arg4[%c0_i32_27, %c5_i32_28, %c0_i32_29] : memref<1x8x128xf32, #tpu.memory_space<vmem>> -> memref<1x1x128xf32, #tpu.memory_space<vmem>>
    %46 = tpu.memref_squeeze %45 : memref<1x1x128xf32, #tpu.memory_space<vmem>> -> memref<1x128xf32, #tpu.memory_space<vmem>>
    %47 = tpu.memref_slice %arg5[%c5_i32_25] : memref<8x!tpu.dma_semaphore, #tpu.memory_space<semaphore_mem>> -> memref<1x!tpu.dma_semaphore, #tpu.memory_space<semaphore_mem>>
    %48 = tpu.memref_squeeze %47 : memref<1x!tpu.dma_semaphore, #tpu.memory_space<semaphore_mem>> -> memref<!tpu.dma_semaphore, #tpu.memory_space<semaphore_mem>>
    tpu.enqueue_dma source(%44 : memref<1x128xf32, #tpu.memory_space<any>>) target(%46 : memref<1x128xf32, #tpu.memory_space<vmem>>) target_semaphore(%48 : memref<!tpu.dma_semaphore, #tpu.memory_space<semaphore_mem>>)
    %c6_i32 = arith.constant 6 : i32
    %49 = arith.addi %0, %c6_i32 : i32
    %50 = arith.index_cast %49 : i32 to index
    %51 = memref.load %arg1[%50] : memref<16xi32, #tpu.memory_space<smem>>
    %c6_i32_30 = arith.constant 6 : i32
    %c0_i32_31 = arith.constant 0 : i32
    %52 = tpu.memref_slice %arg2[%51, %c0_i32_31] : memref<64x128xf32, #tpu.memory_space<any>> -> memref<1x128xf32, #tpu.memory_space<any>>
    %c0_i32_32 = arith.constant 0 : i32
    %c6_i32_33 = arith.constant 6 : i32
    %c0_i32_34 = arith.constant 0 : i32
    %53 = tpu.memref_slice %arg4[%c0_i32_32, %c6_i32_33, %c0_i32_34] : memref<1x8x128xf32, #tpu.memory_space<vmem>> -> memref<1x1x128xf32, #tpu.memory_space<vmem>>
    %54 = tpu.memref_squeeze %53 : memref<1x1x128xf32, #tpu.memory_space<vmem>> -> memref<1x128xf32, #tpu.memory_space<vmem>>
    %55 = tpu.memref_slice %arg5[%c6_i32_30] : memref<8x!tpu.dma_semaphore, #tpu.memory_space<semaphore_mem>> -> memref<1x!tpu.dma_semaphore, #tpu.memory_space<semaphore_mem>>
    %56 = tpu.memref_squeeze %55 : memref<1x!tpu.dma_semaphore, #tpu.memory_space<semaphore_mem>> -> memref<!tpu.dma_semaphore, #tpu.memory_space<semaphore_mem>>
    tpu.enqueue_dma source(%52 : memref<1x128xf32, #tpu.memory_space<any>>) target(%54 : memref<1x128xf32, #tpu.memory_space<vmem>>) target_semaphore(%56 : memref<!tpu.dma_semaphore, #tpu.memory_space<semaphore_mem>>)
    %c7_i32 = arith.constant 7 : i32
    %57 = arith.addi %0, %c7_i32 : i32
    %58 = arith.index_cast %57 : i32 to index
    %59 = memref.load %arg1[%58] : memref<16xi32, #tpu.memory_space<smem>>
    %c7_i32_35 = arith.constant 7 : i32
    %c0_i32_36 = arith.constant 0 : i32
    %60 = tpu.memref_slice %arg2[%59, %c0_i32_36] : memref<64x128xf32, #tpu.memory_space<any>> -> memref<1x128xf32, #tpu.memory_space<any>>
    %c0_i32_37 = arith.constant 0 : i32
    %c7_i32_38 = arith.constant 7 : i32
    %c0_i32_39 = arith.constant 0 : i32
    %61 = tpu.memref_slice %arg4[%c0_i32_37, %c7_i32_38, %c0_i32_39] : memref<1x8x128xf32, #tpu.memory_space<vmem>> -> memref<1x1x128xf32, #tpu.memory_space<vmem>>
    %62 = tpu.memref_squeeze %61 : memref<1x1x128xf32, #tpu.memory_space<vmem>> -> memref<1x128xf32, #tpu.memory_space<vmem>>
    %63 = tpu.memref_slice %arg5[%c7_i32_35] : memref<8x!tpu.dma_semaphore, #tpu.memory_space<semaphore_mem>> -> memref<1x!tpu.dma_semaphore, #tpu.memory_space<semaphore_mem>>
    %64 = tpu.memref_squeeze %63 : memref<1x!tpu.dma_semaphore, #tpu.memory_space<semaphore_mem>> -> memref<!tpu.dma_semaphore, #tpu.memory_space<semaphore_mem>>
    tpu.enqueue_dma source(%60 : memref<1x128xf32, #tpu.memory_space<any>>) target(%62 : memref<1x128xf32, #tpu.memory_space<vmem>>) target_semaphore(%64 : memref<!tpu.dma_semaphore, #tpu.memory_space<semaphore_mem>>)
    %c0_i32_40 = arith.constant 0 : i32
    %c0_i32_41 = arith.constant 0 : i32
    %65 = tpu.memref_slice %arg2[%3, %c0_i32_41] : memref<64x128xf32, #tpu.memory_space<any>> -> memref<1x128xf32, #tpu.memory_space<any>>
    %c0_i32_42 = arith.constant 0 : i32
    %c0_i32_43 = arith.constant 0 : i32
    %c0_i32_44 = arith.constant 0 : i32
    %66 = tpu.memref_slice %arg4[%c0_i32_42, %c0_i32_43, %c0_i32_44] : memref<1x8x128xf32, #tpu.memory_space<vmem>> -> memref<1x1x128xf32, #tpu.memory_space<vmem>>
    %67 = tpu.memref_squeeze %66 : memref<1x1x128xf32, #tpu.memory_space<vmem>> -> memref<1x128xf32, #tpu.memory_space<vmem>>
    %68 = tpu.memref_slice %arg5[%c0_i32_40] : memref<8x!tpu.dma_semaphore, #tpu.memory_space<semaphore_mem>> -> memref<1x!tpu.dma_semaphore, #tpu.memory_space<semaphore_mem>>
    %69 = tpu.memref_squeeze %68 : memref<1x!tpu.dma_semaphore, #tpu.memory_space<semaphore_mem>> -> memref<!tpu.dma_semaphore, #tpu.memory_space<semaphore_mem>>
    tpu.wait_dma2 semaphore(%69 : memref<!tpu.dma_semaphore, #tpu.memory_space<semaphore_mem>>) src(%65 : memref<1x128xf32, #tpu.memory_space<any>>) dst(%67 : memref<1x128xf32, #tpu.memory_space<vmem>>)
    %c1_i32_45 = arith.constant 1 : i32
    %c0_i32_46 = arith.constant 0 : i32
    %70 = tpu.memref_slice %arg2[%11, %c0_i32_46] : memref<64x128xf32, #tpu.memory_space<any>> -> memref<1x128xf32, #tpu.memory_space<any>>
    %c0_i32_47 = arith.constant 0 : i32
    %c1_i32_48 = arith.constant 1 : i32
    %c0_i32_49 = arith.constant 0 : i32
    %71 = tpu.memref_slice %arg4[%c0_i32_47, %c1_i32_48, %c0_i32_49] : memref<1x8x128xf32, #tpu.memory_space<vmem>> -> memref<1x1x128xf32, #tpu.memory_space<vmem>>
    %72 = tpu.memref_squeeze %71 : memref<1x1x128xf32, #tpu.memory_space<vmem>> -> memref<1x128xf32, #tpu.memory_space<vmem>>
    %73 = tpu.memref_slice %arg5[%c1_i32_45] : memref<8x!tpu.dma_semaphore, #tpu.memory_space<semaphore_mem>> -> memref<1x!tpu.dma_semaphore, #tpu.memory_space<semaphore_mem>>
    %74 = tpu.memref_squeeze %73 : memref<1x!tpu.dma_semaphore, #tpu.memory_space<semaphore_mem>> -> memref<!tpu.dma_semaphore, #tpu.memory_space<semaphore_mem>>
    tpu.wait_dma2 semaphore(%74 : memref<!tpu.dma_semaphore, #tpu.memory_space<semaphore_mem>>) src(%70 : memref<1x128xf32, #tpu.memory_space<any>>) dst(%72 : memref<1x128xf32, #tpu.memory_space<vmem>>)
    %c2_i32_50 = arith.constant 2 : i32
    %c0_i32_51 = arith.constant 0 : i32
    %75 = tpu.memref_slice %arg2[%19, %c0_i32_51] : memref<64x128xf32, #tpu.memory_space<any>> -> memref<1x128xf32, #tpu.memory_space<any>>
    %c0_i32_52 = arith.constant 0 : i32
    %c2_i32_53 = arith.constant 2 : i32
    %c0_i32_54 = arith.constant 0 : i32
    %76 = tpu.memref_slice %arg4[%c0_i32_52, %c2_i32_53, %c0_i32_54] : memref<1x8x128xf32, #tpu.memory_space<vmem>> -> memref<1x1x128xf32, #tpu.memory_space<vmem>>
    %77 = tpu.memref_squeeze %76 : memref<1x1x128xf32, #tpu.memory_space<vmem>> -> memref<1x128xf32, #tpu.memory_space<vmem>>
    %78 = tpu.memref_slice %arg5[%c2_i32_50] : memref<8x!tpu.dma_semaphore, #tpu.memory_space<semaphore_mem>> -> memref<1x!tpu.dma_semaphore, #tpu.memory_space<semaphore_mem>>
    %79 = tpu.memref_squeeze %78 : memref<1x!tpu.dma_semaphore, #tpu.memory_space<semaphore_mem>> -> memref<!tpu.dma_semaphore, #tpu.memory_space<semaphore_mem>>
    tpu.wait_dma2 semaphore(%79 : memref<!tpu.dma_semaphore, #tpu.memory_space<semaphore_mem>>) src(%75 : memref<1x128xf32, #tpu.memory_space<any>>) dst(%77 : memref<1x128xf32, #tpu.memory_space<vmem>>)
    %c3_i32_55 = arith.constant 3 : i32
    %c0_i32_56 = arith.constant 0 : i32
    %80 = tpu.memref_slice %arg2[%27, %c0_i32_56] : memref<64x128xf32, #tpu.memory_space<any>> -> memref<1x128xf32, #tpu.memory_space<any>>
    %c0_i32_57 = arith.constant 0 : i32
    %c3_i32_58 = arith.constant 3 : i32
    %c0_i32_59 = arith.constant 0 : i32
    %81 = tpu.memref_slice %arg4[%c0_i32_57, %c3_i32_58, %c0_i32_59] : memref<1x8x128xf32, #tpu.memory_space<vmem>> -> memref<1x1x128xf32, #tpu.memory_space<vmem>>
    %82 = tpu.memref_squeeze %81 : memref<1x1x128xf32, #tpu.memory_space<vmem>> -> memref<1x128xf32, #tpu.memory_space<vmem>>
    %83 = tpu.memref_slice %arg5[%c3_i32_55] : memref<8x!tpu.dma_semaphore, #tpu.memory_space<semaphore_mem>> -> memref<1x!tpu.dma_semaphore, #tpu.memory_space<semaphore_mem>>
    %84 = tpu.memref_squeeze %83 : memref<1x!tpu.dma_semaphore, #tpu.memory_space<semaphore_mem>> -> memref<!tpu.dma_semaphore, #tpu.memory_space<semaphore_mem>>
    tpu.wait_dma2 semaphore(%84 : memref<!tpu.dma_semaphore, #tpu.memory_space<semaphore_mem>>) src(%80 : memref<1x128xf32, #tpu.memory_space<any>>) dst(%82 : memref<1x128xf32, #tpu.memory_space<vmem>>)
    %c4_i32_60 = arith.constant 4 : i32
    %c0_i32_61 = arith.constant 0 : i32
    %85 = tpu.memref_slice %arg2[%35, %c0_i32_61] : memref<64x128xf32, #tpu.memory_space<any>> -> memref<1x128xf32, #tpu.memory_space<any>>
    %c0_i32_62 = arith.constant 0 : i32
    %c4_i32_63 = arith.constant 4 : i32
    %c0_i32_64 = arith.constant 0 : i32
    %86 = tpu.memref_slice %arg4[%c0_i32_62, %c4_i32_63, %c0_i32_64] : memref<1x8x128xf32, #tpu.memory_space<vmem>> -> memref<1x1x128xf32, #tpu.memory_space<vmem>>
    %87 = tpu.memref_squeeze %86 : memref<1x1x128xf32, #tpu.memory_space<vmem>> -> memref<1x128xf32, #tpu.memory_space<vmem>>
    %88 = tpu.memref_slice %arg5[%c4_i32_60] : memref<8x!tpu.dma_semaphore, #tpu.memory_space<semaphore_mem>> -> memref<1x!tpu.dma_semaphore, #tpu.memory_space<semaphore_mem>>
    %89 = tpu.memref_squeeze %88 : memref<1x!tpu.dma_semaphore, #tpu.memory_space<semaphore_mem>> -> memref<!tpu.dma_semaphore, #tpu.memory_space<semaphore_mem>>
    tpu.wait_dma2 semaphore(%89 : memref<!tpu.dma_semaphore, #tpu.memory_space<semaphore_mem>>) src(%85 : memref<1x128xf32, #tpu.memory_space<any>>) dst(%87 : memref<1x128xf32, #tpu.memory_space<vmem>>)
    %c5_i32_65 = arith.constant 5 : i32
    %c0_i32_66 = arith.constant 0 : i32
    %90 = tpu.memref_slice %arg2[%43, %c0_i32_66] : memref<64x128xf32, #tpu.memory_space<any>> -> memref<1x128xf32, #tpu.memory_space<any>>
    %c0_i32_67 = arith.constant 0 : i32
    %c5_i32_68 = arith.constant 5 : i32
    %c0_i32_69 = arith.constant 0 : i32
    %91 = tpu.memref_slice %arg4[%c0_i32_67, %c5_i32_68, %c0_i32_69] : memref<1x8x128xf32, #tpu.memory_space<vmem>> -> memref<1x1x128xf32, #tpu.memory_space<vmem>>
    %92 = tpu.memref_squeeze %91 : memref<1x1x128xf32, #tpu.memory_space<vmem>> -> memref<1x128xf32, #tpu.memory_space<vmem>>
    %93 = tpu.memref_slice %arg5[%c5_i32_65] : memref<8x!tpu.dma_semaphore, #tpu.memory_space<semaphore_mem>> -> memref<1x!tpu.dma_semaphore, #tpu.memory_space<semaphore_mem>>
    %94 = tpu.memref_squeeze %93 : memref<1x!tpu.dma_semaphore, #tpu.memory_space<semaphore_mem>> -> memref<!tpu.dma_semaphore, #tpu.memory_space<semaphore_mem>>
    tpu.wait_dma2 semaphore(%94 : memref<!tpu.dma_semaphore, #tpu.memory_space<semaphore_mem>>) src(%90 : memref<1x128xf32, #tpu.memory_space<any>>) dst(%92 : memref<1x128xf32, #tpu.memory_space<vmem>>)
    %c6_i32_70 = arith.constant 6 : i32
    %c0_i32_71 = arith.constant 0 : i32
    %95 = tpu.memref_slice %arg2[%51, %c0_i32_71] : memref<64x128xf32, #tpu.memory_space<any>> -> memref<1x128xf32, #tpu.memory_space<any>>
    %c0_i32_72 = arith.constant 0 : i32
    %c6_i32_73 = arith.constant 6 : i32
    %c0_i32_74 = arith.constant 0 : i32
    %96 = tpu.memref_slice %arg4[%c0_i32_72, %c6_i32_73, %c0_i32_74] : memref<1x8x128xf32, #tpu.memory_space<vmem>> -> memref<1x1x128xf32, #tpu.memory_space<vmem>>
    %97 = tpu.memref_squeeze %96 : memref<1x1x128xf32, #tpu.memory_space<vmem>> -> memref<1x128xf32, #tpu.memory_space<vmem>>
    %98 = tpu.memref_slice %arg5[%c6_i32_70] : memref<8x!tpu.dma_semaphore, #tpu.memory_space<semaphore_mem>> -> memref<1x!tpu.dma_semaphore, #tpu.memory_space<semaphore_mem>>
    %99 = tpu.memref_squeeze %98 : memref<1x!tpu.dma_semaphore, #tpu.memory_space<semaphore_mem>> -> memref<!tpu.dma_semaphore, #tpu.memory_space<semaphore_mem>>
    tpu.wait_dma2 semaphore(%99 : memref<!tpu.dma_semaphore, #tpu.memory_space<semaphore_mem>>) src(%95 : memref<1x128xf32, #tpu.memory_space<any>>) dst(%97 : memref<1x128xf32, #tpu.memory_space<vmem>>)
    %c7_i32_75 = arith.constant 7 : i32
    %c0_i32_76 = arith.constant 0 : i32
    %100 = tpu.memref_slice %arg2[%59, %c0_i32_76] : memref<64x128xf32, #tpu.memory_space<any>> -> memref<1x128xf32, #tpu.memory_space<any>>
    %c0_i32_77 = arith.constant 0 : i32
    %c7_i32_78 = arith.constant 7 : i32
    %c0_i32_79 = arith.constant 0 : i32
    %101 = tpu.memref_slice %arg4[%c0_i32_77, %c7_i32_78, %c0_i32_79] : memref<1x8x128xf32, #tpu.memory_space<vmem>> -> memref<1x1x128xf32, #tpu.memory_space<vmem>>
    %102 = tpu.memref_squeeze %101 : memref<1x1x128xf32, #tpu.memory_space<vmem>> -> memref<1x128xf32, #tpu.memory_space<vmem>>
    %103 = tpu.memref_slice %arg5[%c7_i32_75] : memref<8x!tpu.dma_semaphore, #tpu.memory_space<semaphore_mem>> -> memref<1x!tpu.dma_semaphore, #tpu.memory_space<semaphore_mem>>
    %104 = tpu.memref_squeeze %103 : memref<1x!tpu.dma_semaphore, #tpu.memory_space<semaphore_mem>> -> memref<!tpu.dma_semaphore, #tpu.memory_space<semaphore_mem>>
    tpu.wait_dma2 semaphore(%104 : memref<!tpu.dma_semaphore, #tpu.memory_space<semaphore_mem>>) src(%100 : memref<1x128xf32, #tpu.memory_space<any>>) dst(%102 : memref<1x128xf32, #tpu.memory_space<vmem>>)
    %c0 = arith.constant 0 : index
    %c0_80 = arith.constant 0 : index
    %c0_81 = arith.constant 0 : index
    %105 = vector.load %arg4[%c0, %c0_80, %c0_81] : memref<1x8x128xf32, #tpu.memory_space<vmem>>, vector<1x8x128xf32>
    %106 = vector.shape_cast %105 : vector<1x8x128xf32> to vector<8x128xf32>
    %c0_82 = arith.constant 0 : index
    %c0_83 = arith.constant 0 : index
    %107 = vector.load %arg3[%c0_82, %c0_83] : memref<8x128xf32, #tpu.memory_space<vmem>>, vector<8x128xf32>
    %108 = arith.addf %106, %107 : vector<8x128xf32>
    %c0_84 = arith.constant 0 : index
    %c0_85 = arith.constant 0 : index
    %c0_86 = arith.constant 0 : index
    %109 = vector.load %arg4[%c0_84, %c0_85, %c0_86] : memref<1x8x128xf32, #tpu.memory_space<vmem>>, vector<1x8x128xf32>
    %110 = vector.shape_cast %109 : vector<1x8x128xf32> to vector<8x128xf32>
    %111 = vector.shape_cast %108 : vector<8x128xf32> to vector<1x8x128xf32>
    tpu.vector_store %arg4[%c0_84, %c0_85, %c0_86], %111 {strides = array<i32>} : memref<1x8x128xf32, #tpu.memory_space<vmem>>, vector<1x8x128xf32>,
    return
  }
  func.func @transform_1(%arg0: i32, %arg1: memref<16xi32, #tpu.memory_space<smem>>) -> (i32, i32) {
    %c0_i32 = arith.constant 0 : i32
    %c0_i32_0 = arith.constant 0 : i32
    %c0_i32_1 = arith.constant 0 : i32
    return %c0_i32, %c0_i32_0 : i32, i32
  }
  func.func @transform_2(%arg0: i32, %arg1: memref<16xi32, #tpu.memory_space<smem>>) -> (i32, i32, i32) {
    %c0_i32 = arith.constant 0 : i32
    %c0_i32_0 = arith.constant 0 : i32
    %c0_i32_1 = arith.constant 0 : i32
    return %arg0, %c0_i32, %c0_i32_0 : i32, i32, i32
  }
}

</mosaic_0001>

<bundles_post_ra>
// kernel: tpu_custom_call.1
= control target key start
LH: loop header
LB: loop body
LE: loop exit
PB: predicated region body
PF: predicated region fallthrough
CT: control target
= control target key end

     0   :  { %s785_s12 = smov [#allocation4]   ;;  %s1060_s0 = inlined_call_operand.hbm [shape: s32[16], index: 0, kind: input, shape index: {}]   ;;  %s1061_s1 = inlined_call_operand.hbm [shape: f32[64,128], index: 1, kind: input, shape index: {}]   ;;  %s1062_s2 = inlined_call_operand.hbm [shape: f32[8,128], index: 2, kind: input, shape index: {}]   ;;  %s1063_s3 = inlined_call_operand.hbm [shape: f32[2,8,128], index: 3, kind: output, shape index: {}]  }
   0x1   :  { %1068 = sst [smem:[#allocation41_spill]] %s1062_s2 }
   0x2   :  { %9 = dma.hbm_to_smem %s1060_s0, 16, %s785_s12, [#allocation3] }
   0x3   :  { %743 = dma.done.wait [#allocation3], 16 }
   0x4   :  { %744 = vsyncadd [#allocation3], 4294967280 }
   0x5   :  { %11 = sfence }
   0x6   :  { %12 = vsyncpa [#allocation6], 0 }
   0x7   :  { %13 = vsyncpa [#allocation7], 0 }
   0x8   :  { %15 = vsyncpa [#allocation7 + $0x1], 0  ;;  %s811_s15 = smov 0   ;;  %s813_s16 = smov 0  }
   0x9   :  { %s815_s17 = smov 0   ;;  %s817_s18 = smov 0  }
   0xa LB: > { %1069 = sst [smem:[#allocation38_spill]] %s779_s17  ;;  %s832_s0 = sadd.s32 4294967295, %s783_s18   ;;  %s783_s18 = sphi %s817_s18, %s1078_s18   ;;  %s779_s17 = sphi %s815_s17, %s1080_s17   ;;  %s775_s16 = sphi %s813_s16, %s1082_s16   ;;  %s771_s15 = sphi %s811_s15, %s1081_s15  }
   0xb   : > { %s413_s19 = sadd.s32 4294967294, %s783_s18   ;;  %s836_s20 = sadd.s32 1, %s783_s18  }
   0xc   : > { %1070 = sst [smem:[#allocation39_spill]] %s836_s20  ;;  %s49_s21 = sadd.s32 1, %s779_s17 }
   0xd   : > { %s46_s22 = ssub.s32 %s783_s18, %s836_s20  ;;  %p59_p0 = scmp.ne.s32.totalorder %s779_s17, %s775_s16 }
   0xe   : > { %p47_p1 = scmp.eq.s32.totalorder %s46_s22, 0  ;;  %p60_p2 = scmp.eq.s32.totalorder %s832_s0, 1 }
   0xf   : > { %p65_p3 = scmp.ne.s32.totalorder %s775_s16, %s771_s15  ;;  %p66_p4 = scmp.eq.s32.totalorder %s413_s19, 1 }
  0x10   : > { %s847_s23 = scalar_select %p47_p1, %s779_s17, %s49_s21  }
  0x11   : > { %p849_p5 = por %p60_p2, %p59_p0  ;;  %p853_p6 = por %p66_p4, %p65_p3 }
  0x12   : > { %1071 = sst [smem:[#allocation40_spill]] %s847_s23  ;;  %p414_p7 = scmp.ge.s32.totalorder %s783_s18, 1 }
  0x13   : > { %s1073_s25 = scalar_select %p853_p6, 1, 0 }
  0x14   : > { %p73_p8 = scmp.lt.s32.totalorder %s783_s18, 3  ;;  %p454_p9 = scmp.eq.s32.totalorder %s832_s0, 0 }
  0x15   : > { %s786_s27 = smov [#allocation5]  }
  0x16   : > { %p860_p10 = pnand %p414_p7, %p73_p8  ;;  %s86_s28 = sshll.u32 %s786_s27, 4  ;;  %s87_s28 = int_to_ptr.vmem [resolvable:$true] %s86_s28 }
  0x17   : > { %s510_s29 = scalar_lea.vmem %s87_s28, 128  ;;  %p518_p3 = scmp.lt.s32.totalorder %s87_s28, %s87_s28 }
  0x18   : > { %p446_p11 = pneg %p860_p10  ;;  %p511_p0 = scmp.ne.s32.totalorder %s87_s28, %s510_s29 }
  0x19   : > { %p519_p4 = scmp.lt.s32.totalorder %s510_s29, %s510_s29 }
  0x1a   : > { %p447_p12 = pnand %p454_p9, %p446_p11 }
  0x1b   : > { %p520_p6 = por %p519_p4, %p518_p3 }
  0x1c   : > { %p501_p13 = pneg %p447_p12 }
  0x1e   : > { %p513_p1 = pnand %p511_p0, %p501_p13 }
  0x20   : > { %p514_p2 = pneg %p513_p1 }
  0x22   : > { %p521_p7 = pnand %p520_p6, %p514_p2 }
  0x24   : > { %524 = shalt.err (!%p521_p7)
}
  0x25   : > { %s1075_s2 = sld [smem:[#allocation41_spill]] }
  0x27   : > { %99 = sbr.rel (%p860_p10) target bundleno = 250 (0xfa), region = 24 }
  0x2b   : > { %449 = dma.hbm_to_vmem [thread:$0]  (!%p447_p12), %s1075_s2, 128, %s87_s28, [#allocation6]  }
  0x2c   : > { %746 = dma.done.wait (%p454_p9), [#allocation6], 128  }
  0x2d   : > { %748 = vsyncadd (%p454_p9), [#allocation6], 4294967168  ;;  %s1064_s5 = sand.u32 1, %s775_s16   ;;  %s879_s6 = sshll.u32 %s832_s0, 3 }
  0x2e   : > { %s418_s7 = sshll.u32 %s1064_s5, 3  ;;  %s115_s8 = sld [smem:[#allocation4 + %s879_s6]] }
  0x2f   : > { %s129_s9 = sadd.s32 1, %s879_s6  ;;  %s885_s10 = scalar_lea.vmem [#allocation8], %s418_s7 }
  0x30   : > { %s125_s11 = sshll.u32 %s885_s10, 4  ;;  %s888_s12 = sld [smem:[#allocation4 + %s129_s9]]  ;;  %s890_s11 = int_to_ptr.vmem [resolvable:$true] %s125_s11 }
  0x31   : > { %s133_s13 = scalar_lea.vmem %s885_s10, 1 [#allocation8]  ;;  %s146_s19 = sadd.s32 2, %s879_s6 }
  0x32   : > { %s142_s14 = sshll.u32 %s133_s13, 4  ;;  %s896_s21 = sld [smem:[#allocation4 + %s146_s19]]  ;;  %s894_s14 = int_to_ptr.vmem [resolvable:$true] %s142_s14 }
  0x33   : > { %s150_s26 = scalar_lea.vmem %s885_s10, 2 [#allocation8]  ;;  %s905_s5 = scalar_lea.hbm %s1061_s1, 1024 }
  0x34   : > { %s420_s22 = sshll.u32 %s115_s8, 4  ;;  %s159_s30 = sshll.u32 %s150_s26, 4  ;;  %s926_s30 = int_to_ptr.vmem [resolvable:$true] %s159_s30 }
  0x35   : > { %s117_s29 = scalar_lea.hbm %s1061_s1, %s420_s22 }
  0x36   : > { %s525_s4 = scalar_lea.hbm %s117_s29, 16  ;;  %p528_p8 = scmp.lt.s32.totalorder %s117_s29, %s1061_s1 }
  0x37   : > { %p526_p6 = scmp.ne.s32.totalorder %s117_s29, %s525_s4  ;;  %p529_p9 = scmp.lt.s32.totalorder %s905_s5, %s525_s4 }
  0x39   : > { %p530_p10 = por %p529_p9, %p528_p8 }
  0x3b   : > { %p531_p11 = pnand %p530_p10, %p526_p6 }
  0x3d   : > { %534 = shalt.err (!%p531_p11)  }
  0x3e   : > { %s535_s8 = scalar_lea.vmem %s890_s11, 16  ;;  %s787_s19 = smov [#allocation8]  }
  0x3f   : > { %p536_p12 = scmp.ne.s32.totalorder %s890_s11, %s535_s8  ;;  %s537_s22 = sshll.u32 %s787_s19, 4  ;;  %s913_s22 = int_to_ptr.vmem [resolvable:$false] %s537_s22 }
  0x40   : > { %s916_s2 = scalar_lea.vmem %s913_s22, 256  ;;  %p540_p13 = scmp.lt.s32.totalorder %s890_s11, %s913_s22 }
  0x41   : > { %p541_p0 = scmp.lt.s32.totalorder %s916_s2, %s535_s8 }
  0x43   : > { %p542_p1 = por %p541_p0, %p540_p13 }
  0x45   : > { %p543_p2 = pnand %p542_p1, %p536_p12 }
  0x47   : > { %546 = shalt.err (!%p543_p2)  }
  0x48   : > { %128 = dma.hbm_to_vmem [thread:$0]  %s117_s29, 16, %s890_s11, [#allocation2] }
  0x49   : > { %s421_s26 = sshll.u32 %s888_s12, 4  ;;  %s163_s7 = sadd.s32 3, %s879_s6 }
  0x4a   : > { %s132_s4 = scalar_lea.hbm %s1061_s1, %s421_s26 }
  0x4b   : > { %s547_s9 = scalar_lea.hbm %s132_s4, 16  ;;  %p550_p4 = scmp.lt.s32.totalorder %s132_s4, %s1061_s1 }
  0x4c   : > { %p548_p3 = scmp.ne.s32.totalorder %s132_s4, %s547_s9  ;;  %p551_p7 = scmp.lt.s32.totalorder %s905_s5, %s547_s9 }
  0x4e   : > { %p552_p6 = por %p551_p7, %p550_p4 }
  0x50   : > { %p553_p8 = pnand %p552_p6, %p548_p3 }
  0x52   : > { %556 = shalt.err (!%p553_p8)  }
  0x53   : > { %s557_s12 = scalar_lea.vmem %s894_s14, 16  ;;  %p562_p10 = scmp.lt.s32.totalorder %s894_s14, %s913_s22 }
  0x54   : > { %p558_p9 = scmp.ne.s32.totalorder %s894_s14, %s557_s12  ;;  %p563_p11 = scmp.lt.s32.totalorder %s916_s2, %s557_s12 }
  0x56   : > { %p564_p12 = por %p563_p11, %p562_p10 }
  0x58   : > { %p565_p0 = pnand %p564_p12, %p558_p9 }
  0x5a   : > { %568 = shalt.err (!%p565_p0)  }
  0x5b   : > { %145 = dma.hbm_to_vmem [thread:$0]  %s132_s4, 16, %s894_s14, [#allocation2 + $0x1] }
  0x5c   : > { %s422_s29 = sshll.u32 %s896_s21, 4  ;;  %s164_s19 = sld [smem:[#allocation4 + %s163_s7]] }
  0x5d   : > { %s149_s28 = scalar_lea.hbm %s1061_s1, %s422_s29  ;;  %s167_s9 = scalar_lea.vmem %s885_s10, 3 [#allocation8] }
  0x5e   : > { %s569_s13 = scalar_lea.hbm %s149_s28, 16  ;;  %p572_p2 = scmp.lt.s32.totalorder %s149_s28, %s1061_s1 }
  0x5f   : > { %p570_p1 = scmp.ne.s32.totalorder %s149_s28, %s569_s13  ;;  %p573_p3 = scmp.lt.s32.totalorder %s905_s5, %s569_s13 }
  0x61   : > { %p574_p4 = por %p573_p3, %p572_p2 }
  0x63   : > { %p575_p7 = pnand %p574_p4, %p570_p1 }
  0x65   : > { %578 = shalt.err (!%p575_p7)  }
  0x66   : > { %s579_s14 = scalar_lea.vmem %s926_s30, 16  ;;  %p584_p8 = scmp.lt.s32.totalorder %s926_s30, %s913_s22 }
  0x67   : > { %p580_p6 = scmp.ne.s32.totalorder %s926_s30, %s579_s14  ;;  %p585_p9 = scmp.lt.s32.totalorder %s916_s2, %s579_s14 }
  0x69   : > { %p586_p10 = por %p585_p9, %p584_p8 }
  0x6b   : > { %p587_p11 = pnand %p586_p10, %p580_p6 }
  0x6d   : > { %590 = shalt.err (!%p587_p11)  }
  0x6e   : > { %162 = dma.hbm_to_vmem [thread:$0]  %s149_s28, 16, %s926_s30, [#allocation2 + $0x2] }
  0x6f   : > { %s176_s23 = sshll.u32 %s167_s9, 4  ;;  %s180_s21 = sadd.s32 4, %s879_s6  ;;  %s177_s23 = int_to_ptr.vmem [resolvable:$true] %s176_s23 }
  0x70   : > { %s181_s4 = sld [smem:[#allocation4 + %s180_s21]]  ;;  %s184_s7 = scalar_lea.vmem %s885_s10, 4 [#allocation8] }
  0x71   : > { %s197_s12 = sadd.s32 5, %s879_s6  ;;  %s423_s29 = sshll.u32 %s164_s19, 4 }
  0x72   : > { %s193_s26 = sshll.u32 %s184_s7, 4  ;;  %s166_s8 = scalar_lea.hbm %s1061_s1, %s423_s29  ;;  %s963_s26 = int_to_ptr.vmem [resolvable:$true] %s193_s26 }
  0x73   : > { %s591_s14 = scalar_lea.hbm %s166_s8, 16  ;;  %p594_p0 = scmp.lt.s32.totalorder %s166_s8, %s1061_s1 }
  0x74   : > { %p592_p12 = scmp.ne.s32.totalorder %s166_s8, %s591_s14  ;;  %p595_p1 = scmp.lt.s32.totalorder %s905_s5, %s591_s14 }
  0x76   : > { %p596_p2 = por %p595_p1, %p594_p0 }
  0x78   : > { %p597_p3 = pnand %p596_p2, %p592_p12 }
  0x7a   : > { %600 = shalt.err (!%p597_p3)  }
  0x7b   : > { %s601_s30 = scalar_lea.vmem %s177_s23, 16  ;;  %p606_p7 = scmp.lt.s32.totalorder %s177_s23, %s913_s22 }
  0x7c   : > { %p602_p4 = scmp.ne.s32.totalorder %s177_s23, %s601_s30  ;;  %p607_p6 = scmp.lt.s32.totalorder %s916_s2, %s601_s30 }
  0x7e   : > { %p608_p8 = por %p607_p6, %p606_p7 }
  0x80   : > { %p609_p9 = pnand %p608_p8, %p602_p4 }
  0x82   : > { %612 = shalt.err (!%p609_p9)  }
  0x83   : > { %179 = dma.hbm_to_vmem [thread:$0]  %s166_s8, 16, %s177_s23, [#allocation2 + $0x3] }
  0x84   : > { %s198_s19 = sld [smem:[#allocation4 + %s197_s12]]  ;;  %s201_s28 = scalar_lea.vmem %s885_s10, 5 [#allocation8] }
  0x85   : > { %s424_s17 = sshll.u32 %s181_s4, 4  ;;  %s210_s7 = sshll.u32 %s201_s28, 4  ;;  %s211_s7 = int_to_ptr.vmem [resolvable:$true] %s210_s7 }
  0x86   : > { %s183_s21 = scalar_lea.hbm %s1061_s1, %s424_s17 }
  0x87   : > { %s613_s29 = scalar_lea.hbm %s183_s21, 16  ;;  %p616_p11 = scmp.lt.s32.totalorder %s183_s21, %s1061_s1 }
  0x88   : > { %p614_p10 = scmp.ne.s32.totalorder %s183_s21, %s613_s29  ;;  %p617_p12 = scmp.lt.s32.totalorder %s905_s5, %s613_s29 }
  0x8a   : > { %p618_p0 = por %p617_p12, %p616_p11 }
  0x8c   : > { %p619_p1 = pnand %p618_p0, %p614_p10 }
  0x8e   : > { %622 = shalt.err (!%p619_p1)  }
  0x8f   : > { %s623_s23 = scalar_lea.vmem %s963_s26, 16  ;;  %p628_p3 = scmp.lt.s32.totalorder %s963_s26, %s913_s22 }
  0x90   : > { %p624_p2 = scmp.ne.s32.totalorder %s963_s26, %s623_s23  ;;  %p629_p4 = scmp.lt.s32.totalorder %s916_s2, %s623_s23 }
  0x92   : > { %p630_p7 = por %p629_p4, %p628_p3 }
  0x94   : > { %p631_p6 = pnand %p630_p7, %p624_p2 }
  0x96   : > { %634 = shalt.err (!%p631_p6)  }
  0x97   : > { %196 = dma.hbm_to_vmem [thread:$0]  %s183_s21, 16, %s963_s26, [#allocation2 + $0x4] }
  0x98   : > { %s214_s4 = sadd.s32 6, %s879_s6  ;;  %s218_s12 = scalar_lea.vmem %s885_s10, 6 [#allocation8] }
  0x99   : > { %s215_s8 = sld [smem:[#allocation4 + %s214_s4]]  ;;  %s425_s14 = sshll.u32 %s198_s19, 4 }
  0x9a   : > { %s227_s30 = sshll.u32 %s218_s12, 4  ;;  %s200_s20 = scalar_lea.hbm %s1061_s1, %s425_s14  ;;  %s228_s30 = int_to_ptr.vmem [resolvable:$true] %s227_s30 }
  0x9b   : > { %s231_s9 = sadd.s32 7, %s879_s6  ;;  %s635_s29 = scalar_lea.hbm %s200_s20, 16 }
  0x9c   : > { %p636_p8 = scmp.ne.s32.totalorder %s200_s20, %s635_s29  ;;  %p638_p9 = scmp.lt.s32.totalorder %s200_s20, %s1061_s1 }
  0x9d   : > { %p639_p10 = scmp.lt.s32.totalorder %s905_s5, %s635_s29 }
  0x9f   : > { %p640_p11 = por %p639_p10, %p638_p9 }
  0xa1   : > { %p641_p12 = pnand %p640_p11, %p636_p8 }
  0xa3   : > { %644 = shalt.err (!%p641_p12)  }
  0xa4   : > { %s645_s26 = scalar_lea.vmem %s211_s7, 16  ;;  %p650_p1 = scmp.lt.s32.totalorder %s211_s7, %s913_s22 }
  0xa5   : > { %p646_p0 = scmp.ne.s32.totalorder %s211_s7, %s645_s26  ;;  %p651_p2 = scmp.lt.s32.totalorder %s916_s2, %s645_s26 }
  0xa7   : > { %p652_p3 = por %p651_p2, %p650_p1 }
  0xa9   : > { %p653_p4 = pnand %p652_p3, %p646_p0 }
  0xab   : > { %656 = shalt.err (!%p653_p4)  }
  0xac   : > { %213 = dma.hbm_to_vmem [thread:$0]  %s200_s20, 16, %s211_s7, [#allocation2 + $0x5] }
  0xad   : > { %s232_s6 = sld [smem:[#allocation4 + %s231_s9]]  ;;  %s235_s19 = scalar_lea.vmem %s885_s10, 7 [#allocation8] }
  0xae   : > { %s426_s21 = sshll.u32 %s215_s8, 4  ;;  %s244_s23 = sshll.u32 %s235_s19, 4  ;;  %s245_s23 = int_to_ptr.vmem [resolvable:$true] %s244_s23 }
  0xaf   : > { %s217_s14 = scalar_lea.hbm %s1061_s1, %s426_s21 }
  0xb0   : > { %s657_s28 = scalar_lea.hbm %s217_s14, 16  ;;  %p660_p6 = scmp.lt.s32.totalorder %s217_s14, %s1061_s1 }
  0xb1   : > { %p658_p7 = scmp.ne.s32.totalorder %s217_s14, %s657_s28  ;;  %p661_p8 = scmp.lt.s32.totalorder %s905_s5, %s657_s28 }
  0xb3   : > { %p662_p9 = por %p661_p8, %p660_p6 }
  0xb5   : > { %p663_p10 = pnand %p662_p9, %p658_p7 }
  0xb7   : > { %666 = shalt.err (!%p663_p10)  }
  0xb8   : > { %s667_s7 = scalar_lea.vmem %s228_s30, 16  ;;  %p672_p12 = scmp.lt.s32.totalorder %s228_s30, %s913_s22 }
  0xb9   : > { %p668_p11 = scmp.ne.s32.totalorder %s228_s30, %s667_s7  ;;  %p673_p0 = scmp.lt.s32.totalorder %s916_s2, %s667_s7 }
  0xbb   : > { %p674_p1 = por %p673_p0, %p672_p12 }
  0xbd   : > { %p675_p2 = pnand %p674_p1, %p668_p11 }
  0xbf   : > { %678 = shalt.err (!%p675_p2)  }
  0xc0   : > { %230 = dma.hbm_to_vmem [thread:$0]  %s217_s14, 16, %s228_s30, [#allocation2 + $0x6] }
  0xc1   : > { %s427_s8 = sshll.u32 %s232_s6, 4 }
  0xc2   : > { %s234_s27 = scalar_lea.hbm %s1061_s1, %s427_s8 }
  0xc3   : > { %s679_s13 = scalar_lea.hbm %s234_s27, 16  ;;  %p682_p4 = scmp.lt.s32.totalorder %s234_s27, %s1061_s1 }
  0xc4   : > { %p680_p3 = scmp.ne.s32.totalorder %s234_s27, %s679_s13  ;;  %p683_p7 = scmp.lt.s32.totalorder %s905_s5, %s679_s13 }
  0xc6   : > { %p684_p6 = por %p683_p7, %p682_p4 }
  0xc8   : > { %p685_p8 = pnand %p684_p6, %p680_p3 }
  0xca   : > { %688 = shalt.err (!%p685_p8)  }
  0xcb   : > { %s689_s21 = scalar_lea.vmem %s245_s23, 16  ;;  %p694_p10 = scmp.lt.s32.totalorder %s245_s23, %s913_s22 }
  0xcc   : > { %p690_p9 = scmp.ne.s32.totalorder %s245_s23, %s689_s21  ;;  %p695_p11 = scmp.lt.s32.totalorder %s916_s2, %s689_s21 }
  0xce   : > { %p696_p12 = por %p695_p11, %p694_p10 }
  0xd0   : > { %p697_p0 = pnand %p696_p12, %p690_p9 }
  0xd2   : > { %700 = shalt.err (!%p697_p0)  }
  0xd3   : > { %247 = dma.hbm_to_vmem [thread:$0]  %s234_s27, 16, %s245_s23, [#allocation2 + $0x7] }
  0xd4   : > { %749 = dma.done.wait [#allocation2], 16 }
  0xd5   : > { %750 = vsyncadd [#allocation2], 4294967280 }
  0xd6   : > { %751 = dma.done.wait [#allocation2 + $0x1], 16 }
  0xd7   : > { %752 = vsyncadd [#allocation2 + $0x1], 4294967280 }
  0xd8   : > { %753 = dma.done.wait [#allocation2 + $0x2], 16 }
  0xd9   : > { %754 = vsyncadd [#allocation2 + $0x2], 4294967280 }
  0xda   : > { %755 = dma.done.wait [#allocation2 + $0x3], 16 }
  0xdb   : > { %756 = vsyncadd [#allocation2 + $0x3], 4294967280 }
  0xdc   : > { %757 = dma.done.wait [#allocation2 + $0x4], 16 }
  0xdd   : > { %758 = vsyncadd [#allocation2 + $0x4], 4294967280 }
  0xde   : > { %759 = dma.done.wait [#allocation2 + $0x5], 16 }
  0xdf   : > { %760 = vsyncadd [#allocation2 + $0x5], 4294967280 }
  0xe0   : > { %761 = dma.done.wait [#allocation2 + $0x6], 16 }
  0xe1   : > { %762 = vsyncadd [#allocation2 + $0x6], 4294967280 }
  0xe2   : > { %763 = dma.done.wait [#allocation2 + $0x7], 16 }
  0xe3   : > { %764 = vsyncadd [#allocation2 + $0x7], 4294967280  ;;  %s429_s5 = sshll.u32 %s832_s0, 7  ;;  %v265_v0 = vld [vmem:[%s885_s10] sm:$0xff]  ;;  %v266_v1 = vld [vmem:[#allocation5] sm:$0xff]  ;;  %s1076_s4 = sand.u32 1, %s775_s16  }
  0xe4   : > { %v267_v2 = vadd.f32 %v266_v1, %v265_v0  ;;  %s281_s23 = scalar_lea.hbm %s1063_s3, %s429_s5  ;;  %s270_s12 = scalar_lea.sflag [#allocation7], %s1076_s4 }
  0xe5   : > { %s701_s14 = scalar_lea.vmem %s890_s11, 128 }
  0xe6   : > { %268 = vst [vmem:[%s885_s10] sm:$0xff] %v267_v2  ;;  %p702_p1 = scmp.ne.s32.totalorder %s890_s11, %s701_s14  ;;  %p709_p4 = scmp.lt.s32.totalorder %s916_s2, %s701_s14 }
  0xe8   : > { %p703_p2 = pnand %p702_p1, %p849_p5  ;;  %p710_p7 = por %p709_p4, %p540_p13 }
  0xea   : > { %p704_p3 = pneg %p703_p2 }
  0xec   : > { %p711_p6 = pnand %p710_p7, %p704_p3 }
  0xee   : > { %714 = shalt.err (!%p711_p6)
}
  0xef   : > { %s715_s0 = scalar_lea.hbm %s281_s23, 128  ;;  %s719_s17 = scalar_lea.hbm %s1063_s3, 256 }
  0xf0   : > { %p716_p8 = scmp.ne.s32.totalorder %s281_s23, %s715_s0  ;;  %p720_p11 = scmp.lt.s32.totalorder %s281_s23, %s1063_s3 }
  0xf1   : > { %p721_p12 = scmp.lt.s32.totalorder %s719_s17, %s715_s0 }
  0xf2   : > { %p717_p9 = pnand %p716_p8, %p849_p5 }
  0xf3   : > { %p722_p0 = por %p721_p12, %p720_p11 }
  0xf4   : > { %p718_p10 = pneg %p717_p9 }
  0xf6   : > { %p723_p1 = pnand %p722_p0, %p718_p10 }
  0xf8   : > { %726 = shalt.err (!%p723_p1)
}
  0xf9   : > { %444 = dma.vmem_to_hbm [thread:$0]  (%p849_p5), %s890_s11, 128, %s281_s23, %s270_s12  }
  0xfa PF: > { %p456_p13 = scmp.ge.s32.totalorder %s783_s18, 2  ;;  %s295_s22 = sand.u32 1, %s771_s15  }
  0xfb   : > { %p1077_p2 = scmp.ne.s32.totalorder %s1073_s25, 0  ;;  %s296_s2 = scalar_lea.sflag [#allocation7], %s295_s22 }
  0xfd   : > { %p451_p3 = pnand %p456_p13, %p1077_p2 }
  0xff   : > { %p452_p4 = pneg %p451_p3 }
 0x101   : > { %766 = dma.done.wait (%p452_p4), %s296_s2, 128  }
 0x102   : > { %768 = vsyncadd (%p452_p4), %s296_s2, 4294967168  ;;  %s1078_s18 = sld [smem:[#allocation39_spill]]  ;;  %s1081_s15 = smov %s775_s16 }
 0x103   : > { %s1079_s8 = sld [smem:[#allocation38_spill]] }
 0x104   : > { %s1080_s17 = sld [smem:[#allocation40_spill]] }
 0x108   : > { %p18_p7 = scmp.ge.s32.totalorder %s1078_s18, 4  }
 0x109   : > { %s1082_s16 = smov %s1079_s8 }
 0x10a   :  { %20 = sbr.rel (!%p18_p7) target bundleno = 10 (0xa), region = 122 }
 0x10f   :  { %301 = vsyncpa [#allocation6], 1 }
 0x110   :  { %303 = vsyncpa [#allocation6 + $0x1], 1 }
 0x111   :  { %304 = vsyncpa [#allocation7], 1 }
 0x112   :  { %306 = vsyncpa [#allocation7 + $0x1], 1 }
 0x113   :  { %307 = vsyncmov [#allocation2] }
 0x116   :  { %s308_s24 = vpop.sfrf %307 }
 0x117   :  { %p432_p5 = scmp.ne.s32.totalorder %s308_s24, 0 }
 0x119   :  { %312 = shalt.err (%p432_p5)  }
 0x11a   :  { %314 = vsyncmov [#allocation2 + $0x1] }
 0x11d   :  { %s315_s25 = vpop.sfrf %314 }
 0x11e   :  { %p433_p6 = scmp.ne.s32.totalorder %s315_s25, 0 }
 0x120   :  { %319 = shalt.err (%p433_p6)  }
 0x121   :  { %321 = vsyncmov [#allocation2 + $0x2] }
 0x124   :  { %s322_s11 = vpop.sfrf %321 }
 0x125   :  { %p434_p8 = scmp.ne.s32.totalorder %s322_s11, 0 }
 0x127   :  { %326 = shalt.err (%p434_p8)  }
 0x128   :  { %328 = vsyncmov [#allocation2 + $0x3] }
 0x12b   :  { %s329_s20 = vpop.sfrf %328 }
 0x12c   :  { %p435_p9 = scmp.ne.s32.totalorder %s329_s20, 0 }
 0x12e   :  { %333 = shalt.err (%p435_p9)  }
 0x12f   :  { %335 = vsyncmov [#allocation2 + $0x4] }
 0x132   :  { %s336_s1 = vpop.sfrf %335 }
 0x133   :  { %p436_p10 = scmp.ne.s32.totalorder %s336_s1, 0 }
 0x135   :  { %340 = shalt.err (%p436_p10)  }
 0x136   :  { %342 = vsyncmov [#allocation2 + $0x5] }
 0x139   :  { %s343_s3 = vpop.sfrf %342 }
 0x13a   :  { %p437_p11 = scmp.ne.s32.totalorder %s343_s3, 0 }
 0x13c   :  { %347 = shalt.err (%p437_p11)  }
 0x13d   :  { %349 = vsyncmov [#allocation2 + $0x6] }
 0x140   :  { %s350_s15 = vpop.sfrf %349 }
 0x141   :  { %p438_p12 = scmp.ne.s32.totalorder %s350_s15, 0 }
 0x143   :  { %354 = shalt.err (%p438_p12)  }
 0x144   :  { %356 = vsyncmov [#allocation2 + $0x7] }
 0x147   :  { %s357_s16 = vpop.sfrf %356 }
 0x148   :  { %p439_p0 = scmp.ne.s32.totalorder %s357_s16, 0 }
 0x14a   :  { %361 = shalt.err (%p439_p0)  }

</bundles_post_ra>
